<compile_context>
chip_gen: v7x
topology: tpu7x:2x2x1
jax: 0.10.0
libtpu: 0.0.40
codegen_flags: <defaults>
</compile_context>

<pallas_src>
import functools

import jax
import jax.numpy as jnp
from jax.experimental import pallas as pl
from jax.experimental.pallas import tpu as pltpu


def _pick_row_tile(total_rows, row_bytes, override=None, *,
                   max_rows=2048, multiple=32, budget_bytes=4 << 20):
    """Second-minor block size for streamed (rows, lanes) tiles.

    Multiple of 32 so uint8 masks / bf16 inputs stay on native packed tiles;
    capped by a per-block byte budget so 3 inputs x 2 pipeline buffers fit
    comfortably in VMEM on every TPU generation (incl. v7x's 64 MiB).
    Returns the full extent when it already fits (full-dim blocks are always
    legal).  `override` (tests) should be a multiple of 32.
    """
    if override is not None:
        rows = int(override)
    else:
        rows = min(max_rows, max(budget_bytes // max(row_bytes, 1), multiple))
        rows = max((rows // multiple) * multiple, multiple)
    return int(total_rows) if rows >= total_rows else int(rows)


def _stats_kernel(p_ref, t_ref, m_ref, o_ref, *, rows_total, block_rows):
    """Per-tile masked count / mean / M2 (single pass about the tile mean)."""
    p = p_ref[0].astype(jnp.float32)           # (TR, L)
    t = t_ref[0].astype(jnp.float32)
    m = m_ref[0].astype(jnp.float32)

    if rows_total % block_rows != 0:           # static: ragged last tile only
        c = pl.program_id(1)
        row = jax.lax.broadcasted_iota(jnp.int32, p.shape, 0)
        ok = (c * block_rows + row) < rows_total
        p = jnp.where(ok, p, 0.0)              # OOB rows may hold garbage/NaN
        t = jnp.where(ok, t, 0.0)
        m = jnp.where(ok, m, 0.0)

    n = jnp.sum(m, keepdims=True)              # (1, 1)
    inv_n = 1.0 / jnp.maximum(n, 1.0)
    mu_p = jnp.sum(p * m, keepdims=True) * inv_n
    mu_t = jnp.sum(t * m, keepdims=True) * inv_n
    dp = (p - mu_p) * m
    dt = (t - mu_t) * m
    m2_p = jnp.sum(dp * dp, keepdims=True)
    m2_t = jnp.sum(dt * dt, keepdims=True)

    # Pack [n, mu_p, m2_p, mu_t, m2_t] into a single (8, 8) store.
    lane = jax.lax.broadcasted_iota(jnp.int32, (8, 8), 1)
    vec = (jnp.where(lane == 0, n, 0.0)
           + jnp.where(lane == 1, mu_p, 0.0)
           + jnp.where(lane == 2, m2_p, 0.0)
           + jnp.where(lane == 3, mu_t, 0.0)
           + jnp.where(lane == 4, m2_t, 0.0))
    o_ref[0, 0] = vec


def _l1_loss_kernel(s_ref, p_ref, t_ref, m_ref, o_ref, *, rows_total, block_rows):
    """Masked L1 partial sum on the lane-dense view (no neighborhood)."""
    mean_p, inv_std_p, mean_t, inv_std_t = s_ref[0], s_ref[1], s_ref[2], s_ref[3]

    p = p_ref[0].astype(jnp.float32)
    t = t_ref[0].astype(jnp.float32)
    m = m_ref[0].astype(jnp.float32)
    if rows_total % block_rows != 0:
        c = pl.program_id(1)
        row = jax.lax.broadcasted_iota(jnp.int32, p.shape, 0)
        ok = (c * block_rows + row) < rows_total
        p = jnp.where(ok, p, 0.0)
        t = jnp.where(ok, t, 0.0)
        m = jnp.where(ok, m, 0.0)

    d = ((p - mean_p) * inv_std_p - (t - mean_t) * inv_std_t) * m
    part = jnp.sum(jnp.abs(d), keepdims=True)
    o_ref[0, 0] = jnp.broadcast_to(part, (8, 8))


def _grad_loss_kernel(s_ref, p_ref, t_ref, m_ref, o_ref, *,
                      rows_total, block_rows, width, use_roll):
    """Gradient-matching partial sum on one (TH, W) row tile."""
    mean_p, inv_std_p, mean_t, inv_std_t = s_ref[0], s_ref[1], s_ref[2], s_ref[3]

    p = p_ref[0].astype(jnp.float32)           # (TH, W)
    t = t_ref[0].astype(jnp.float32)
    m = m_ref[0].astype(jnp.float32)
    if rows_total % block_rows != 0:
        c = pl.program_id(1)
        row = jax.lax.broadcasted_iota(jnp.int32, p.shape, 0)
        ok = (c * block_rows + row) < rows_total
        p = jnp.where(ok, p, 0.0)
        t = jnp.where(ok, t, 0.0)
        m = jnp.where(ok, m, 0.0)

    d = ((p - mean_p) * inv_std_p - (t - mean_t) * inv_std_t) * m

    # Vertical (sublane) pairs fully inside this row tile; pairs straddling a
    # tile boundary are added by the wrapper on tiny strips (no halo DMA).
    part = jnp.sum(jnp.abs(d[:-2, :] - d[2:, :]) * (m[:-2, :] * m[2:, :]),
                   keepdims=True)

    if use_roll:
        # Horizontal (lane) pairs via XLU rotate instead of unaligned lane
        # slices.  The rolled-iota mask keeps exactly the (j, j+2) pairs and
        # drops the two wrap-around lanes, independent of roll direction.
        lane = jax.lax.broadcasted_iota(jnp.int32, d.shape, 1)
        d_r = pltpu.roll(d, shift=width - 2, axis=1)
        m_r = pltpu.roll(m, shift=width - 2, axis=1)
        lane_r = pltpu.roll(lane, shift=width - 2, axis=1)
        ok_h = (jnp.abs(lane_r - lane) == 2).astype(jnp.float32)
        part += jnp.sum(jnp.abs(d - d_r) * (m * m_r * ok_h), keepdims=True)
    else:
        part += jnp.sum(jnp.abs(d[:, :-2] - d[:, 2:]) * (m[:, :-2] * m[:, 2:]),
                        keepdims=True)

    o_ref[0, 0] = jnp.broadcast_to(part, (8, 8))


@functools.partial(jax.jit,
                   static_argnames=("grad_matching", "stats_rows", "loss_rows"))
def scale_and_shift_invariant_da_loss(prediction, target, gt_depth, mask,
                                      min_depth=None, max_depth=None,
                                      grad_matching=True,
                                      stats_rows=None, loss_rows=None):
    """JAX wrapper matching ScaleAndShiftInvariantDALoss.forward.

    prediction, target, mask: (B, 1, H, W); mask may be bool / uint8 / float,
    prediction / target may be f32 or bf16 (f32 math in-kernel).  gt_depth /
    min_depth / max_depth are accepted for signature parity but unused.
    """
    del gt_depth, min_depth, max_depth
    # TODO(synk): bilinear interpolation (align_corners=True) when prediction
    # and target spatial sizes differ is not implemented; shapes must match.
    assert prediction.shape[-2:] == target.shape[-2:]

    pred = jnp.squeeze(prediction, axis=1)     # (B, H, W)
    tgt = jnp.squeeze(target, axis=1)
    msk = jnp.squeeze(mask, axis=1)
    if msk.dtype != jnp.uint8:                 # stream the mask as 1 B/elem
        msk = msk.astype(jnp.uint8)
    B, H, W = pred.shape

    # ------------- phase 1: per-tile masked statistics (all parallel) -------------
    hw = H * W
    if hw % 128 == 0 and hw >= 128:
        R, L = hw // 128, 128                  # lane-dense view (free reshape)
    else:
        R, L = H, W
    sp = pred.reshape(B, R, L)
    st = tgt.reshape(B, R, L)
    sm = msk.reshape(B, R, L)

    tr = _pick_row_tile(R, L * 4, stats_rows)
    nc_s = pl.cdiv(R, tr)
    stats = pl.pallas_call(
        functools.partial(_stats_kernel, rows_total=R, block_rows=tr),
        grid=(B, nc_s),
        in_specs=[pl.BlockSpec((1, tr, L), lambda b, c: (b, c, 0))] * 3,
        out_specs=pl.BlockSpec((1, 1, 8, 8), lambda b, c: (b, c, 0, 0)),
        out_shape=jax.ShapeDtypeStruct((B, nc_s, 8, 8), jnp.float32),
        compiler_params=pltpu.CompilerParams(
            dimension_semantics=("parallel", "parallel")),
    )(sp, st, sm)

    s = stats[:, :, 0, :].reshape(-1, 8)
    n_i, mu_pi, m2_pi, mu_ti, m2_ti = (s[:, 0], s[:, 1], s[:, 2], s[:, 3], s[:, 4])
    n = jnp.sum(n_i)
    safe_n = jnp.maximum(n, 1.0)
    mean_p = jnp.sum(n_i * mu_pi) / safe_n
    mean_t = jnp.sum(n_i * mu_ti) / safe_n
    # Exact parallel-variance combine: sum_i [M2_i + n_i * (mu_i - mu)^2].
    m2_p = jnp.sum(m2_pi) + jnp.sum(n_i * jnp.square(mu_pi - mean_p))
    m2_t = jnp.sum(m2_ti) + jnp.sum(n_i * jnp.square(mu_ti - mean_t))

    # torch "sum(mask) <= 1" early-exit guard + unbiased std (n-1, torch.std).
    valid = n > 1.0
    denom = jnp.maximum(n - 1.0, 1.0)
    inv_n = jnp.where(valid, 1.0 / safe_n, 0.0)
    inv_std_p = jnp.where(valid, jax.lax.rsqrt(m2_p / denom), 0.0)
    inv_std_t = jnp.where(valid, jax.lax.rsqrt(m2_t / denom), 0.0)
    scalars = jnp.stack([mean_p, inv_std_p, mean_t, inv_std_t]).astype(jnp.float32)

    # ------------- phase 2: re-stream tiles and reduce the loss -------------
    smem_spec = pl.BlockSpec(memory_space=pltpu.MemorySpace.SMEM)
    if grad_matching:
        th = _pick_row_tile(H, W * 4, loss_rows)
        nc_l = pl.cdiv(H, th)
        parts = pl.pallas_call(
            functools.partial(_grad_loss_kernel, rows_total=H, block_rows=th,
                              width=W, use_roll=(W % 128 == 0 and W >= 128)),
            grid=(B, nc_l),
            in_specs=[smem_spec]
                     + [pl.BlockSpec((1, th, W), lambda b, c: (b, c, 0))] * 3,
            out_specs=pl.BlockSpec((1, 1, 8, 8), lambda b, c: (b, c, 0, 0)),
            out_shape=jax.ShapeDtypeStruct((B, nc_l, 8, 8), jnp.float32),
            compiler_params=pltpu.CompilerParams(
                dimension_semantics=("parallel", "parallel")),
        )(scalars, pred, tgt, msk)
        total = jnp.sum(parts[:, :, 0, 0])

        # Seam terms: vertical pairs straddling row-tile boundaries (the 2-row
        # halo equivalent), computed once on tiny gathered strips in plain JAX.
        ups = [u for blk in range(1, nc_l) for u in (blk * th - 2, blk * th - 1)
               if 0 <= u and u + 2 < H]
        if ups:
            iu = jnp.asarray(ups, dtype=jnp.int32)
            p_hi = pred[:, iu, :].astype(jnp.float32)
            p_lo = pred[:, iu + 2, :].astype(jnp.float32)
            t_hi = tgt[:, iu, :].astype(jnp.float32)
            t_lo = tgt[:, iu + 2, :].astype(jnp.float32)
            m_hi = msk[:, iu, :].astype(jnp.float32)
            m_lo = msk[:, iu + 2, :].astype(jnp.float32)
            d_hi = ((p_hi - mean_p) * inv_std_p - (t_hi - mean_t) * inv_std_t) * m_hi
            d_lo = ((p_lo - mean_p) * inv_std_p - (t_lo - mean_t) * inv_std_t) * m_lo
            total = total + jnp.sum(jnp.abs(d_hi - d_lo) * (m_hi * m_lo))
        loss = total * inv_n
    else:
        tl = _pick_row_tile(R, L * 4, loss_rows)
        nc_l = pl.cdiv(R, tl)
        parts = pl.pallas_call(
            functools.partial(_l1_loss_kernel, rows_total=R, block_rows=tl),
            grid=(B, nc_l),
            in_specs=[smem_spec]
                     + [pl.BlockSpec((1, tl, L), lambda b, c: (b, c, 0))] * 3,
            out_specs=pl.BlockSpec((1, 1, 8, 8), lambda b, c: (b, c, 0, 0)),
            out_shape=jax.ShapeDtypeStruct((B, nc_l, 8, 8), jnp.float32),
            compiler_params=pltpu.CompilerParams(
                dimension_semantics=("parallel", "parallel")),
        )(scalars, sp, st, sm)
        loss = jnp.sum(parts[:, :, 0, 0]) * inv_n

    # torch returns `input * 0.0` (effectively zero) when sum(mask) <= 1.
    return jnp.where(valid, loss, 0.0)


def _reference(prediction, target, mask, grad_matching=True):
    """Pure-JAX reference of the torch forward (for verification)."""
    pred = jnp.squeeze(prediction, axis=1).astype(jnp.float32)
    tgt = jnp.squeeze(target, axis=1).astype(jnp.float32)
    m = jnp.squeeze(mask, axis=1).astype(jnp.float32)
    n = jnp.sum(m)
    mean_p = jnp.sum(pred * m) / n
    mean_t = jnp.sum(tgt * m) / n
    std_p = jnp.sqrt(jnp.sum(m * (pred - mean_p) ** 2) / (n - 1.0))
    std_t = jnp.sqrt(jnp.sum(m * (tgt - mean_t) ** 2) / (n - 1.0))
    sp = (pred - mean_p) / std_p
    st = (tgt - mean_t) / std_t
    if grad_matching:
        d = (sp - st) * m
        v = jnp.abs(d[:, 0:-2, :] - d[:, 2:, :]) * (m[:, 0:-2, :] * m[:, 2:, :])
        h = jnp.abs(d[:, :, 0:-2] - d[:, :, 2:]) * (m[:, :, 0:-2] * m[:, :, 2:])
        return (jnp.sum(h) + jnp.sum(v)) / n
    return jnp.sum(jnp.abs(sp - st) * m) / n


if __name__ == "__main__":
    def make_inputs(key, B, H, W, dtype=jnp.float32):
        k1, k2, k3, k4 = jax.random.split(key, 4)
        pred = jax.random.normal(k1, (B, 1, H, W), dtype=jnp.float32).astype(dtype)
        tgt = (jax.random.normal(k2, (B, 1, H, W), dtype=jnp.float32) * 2.0
               + 1.0).astype(dtype)
        gt = jax.random.uniform(k3, (B, 1, H, W), minval=0.1, maxval=10.0)
        m = jax.random.uniform(k4, (B, 1, H, W)) < 0.7        # bool mask
        return pred, tgt, gt, m

    # Case 1: small maps -> full-extent blocks (no spatial tiling).
    pred, tgt, gt, msk = make_inputs(jax.random.PRNGKey(0), 2, 16, 16)
    for gm in (True, False):
        out = scale_and_shift_invariant_da_loss(pred, tgt, gt, msk,
                                                grad_matching=gm)
        out = jax.block_until_ready(out)
        ref = _reference(pred, tgt, msk, grad_matching=gm)
        assert jnp.allclose(out, ref, rtol=2e-4, atol=1e-5), ("case1", gm, out, ref)

    # Case 2: lane-aligned width (roll path) + forced 32-row tiles so the grid
    # is spatially chunked, the last chunk is ragged and cross-tile vertical
    # seams are exercised.
    pred, tgt, gt, msk = make_inputs(jax.random.PRNGKey(1), 2, 80, 128)
    for gm in (True, False):
        out = scale_and_shift_invariant_da_loss(
            pred, tgt, gt, msk, grad_matching=gm, stats_rows=32, loss_rows=32)
        out = jax.block_until_ready(out)
        ref = _reference(pred, tgt, msk, grad_matching=gm)
        assert jnp.allclose(out, ref, rtol=2e-4, atol=1e-5), ("case2", gm, out, ref)

    # Case 3: bf16 prediction/target streamed directly (f32 math in-kernel).
    pred_b = pred.astype(jnp.bfloat16)
    tgt_b = tgt.astype(jnp.bfloat16)
    out = scale_and_shift_invariant_da_loss(
        pred_b, tgt_b, gt, msk, grad_matching=True, stats_rows=32, loss_rows=32)
    out = jax.block_until_ready(out)
    ref = _reference(pred_b, tgt_b, msk, grad_matching=True)
    assert jnp.allclose(out, ref, rtol=2e-4, atol=1e-5), ("case3", out, ref)

    # Case 4: degenerate mask (torch early-exit, sum(mask) <= 1) -> 0.0.
    zero_mask = jnp.zeros_like(msk)
    out = scale_and_shift_invariant_da_loss(pred, tgt, gt, zero_mask,
                                            grad_matching=True)
    out = jax.block_until_ready(out)
    assert jnp.allclose(out, 0.0), ("case4", out)

    print("KERNEL_OK")
</pallas_src>

<mosaic_0001>
module attributes {stable_mosaic.version = 11 : i64} {
  func.func @_stats_kernel(%arg0: i32, %arg1: i32, %arg2: memref<1x2x128xf32, #tpu.memory_space<vmem>>, %arg3: memref<1x2x128xf32, #tpu.memory_space<vmem>>, %arg4: memref<1x2x128xi8, #tpu.memory_space<vmem>>, %arg5: memref<1x1x8x8xf32, #tpu.memory_space<vmem>>) attributes {dimension_semantics = [#tpu.dimension_semantics<parallel>, #tpu.dimension_semantics<parallel>], iteration_bounds = array<i64: 2, 1>, scalar_prefetch = 0 : i64, scratch_operands = 0 : i64, tpu.core_type = #tpu.core_type<tc>, window_params = [{transform_indices = @transform_0, window_bounds = array<i64: 1, 2, 128>}, {transform_indices = @transform_1, window_bounds = array<i64: 1, 2, 128>}, {transform_indices = @transform_2, window_bounds = array<i64: 1, 2, 128>}, {transform_indices = @transform_3, window_bounds = array<i64: 1, 1, 8, 8>}]} {
    %c0 = arith.constant 0 : index
    %c0_0 = arith.constant 0 : index
    %c0_1 = arith.constant 0 : index
    %0 = vector.load %arg2[%c0, %c0_0, %c0_1] : memref<1x2x128xf32, #tpu.memory_space<vmem>>, vector<1x2x128xf32>
    %1 = vector.shape_cast %0 : vector<1x2x128xf32> to vector<2x128xf32>
    %c0_2 = arith.constant 0 : index
    %c0_3 = arith.constant 0 : index
    %c0_4 = arith.constant 0 : index
    %2 = vector.load %arg3[%c0_2, %c0_3, %c0_4] : memref<1x2x128xf32, #tpu.memory_space<vmem>>, vector<1x2x128xf32>
    %3 = vector.shape_cast %2 : vector<1x2x128xf32> to vector<2x128xf32>
    %c0_5 = arith.constant 0 : index
    %c0_6 = arith.constant 0 : index
    %c0_7 = arith.constant 0 : index
    %4 = vector.load %arg4[%c0_5, %c0_6, %c0_7] : memref<1x2x128xi8, #tpu.memory_space<vmem>>, vector<1x2x128xi8>
    %5 = vector.shape_cast %4 : vector<1x2x128xi8> to vector<2x128xi8>
    %6 = arith.uitofp %5 : vector<2x128xi8> to vector<2x128xf32>
    %7 = vector.shape_cast %6 : vector<2x128xf32> to vector<1x2x128xf32>
    %cst = arith.constant dense<0.000000e+00> : vector<1xf32>
    %8 = vector.multi_reduction <add>, %7, %cst [1, 2] : vector<1x2x128xf32> to vector<1xf32>
    %9 = vector.shape_cast %8 : vector<1xf32> to vector<1x1x1xf32>
    %10 = vector.extract %9[0, 0, 0] : f32 from vector<1x1x1xf32>
    %11 = vector.broadcast %10 : f32 to vector<1x1xf32>
    %cst_8 = arith.constant 1.000000e+00 : f32
    %12 = vector.broadcast %cst_8 : f32 to vector<1x1xf32>
    %13 = arith.maximumf %11, %12 : vector<1x1xf32>
    %cst_9 = arith.constant 1.000000e+00 : f32
    %14 = vector.broadcast %cst_9 : f32 to vector<1x1xf32>
    %15 = arith.divf %14, %13 : vector<1x1xf32>
    %16 = arith.mulf %1, %6 : vector<2x128xf32>
    %17 = vector.shape_cast %16 : vector<2x128xf32> to vector<1x2x128xf32>
    %cst_10 = arith.constant dense<0.000000e+00> : vector<1xf32>
    %18 = vector.multi_reduction <add>, %17, %cst_10 [1, 2] : vector<1x2x128xf32> to vector<1xf32>
    %19 = vector.shape_cast %18 : vector<1xf32> to vector<1x1x1xf32>
    %20 = vector.extract %19[0, 0, 0] : f32 from vector<1x1x1xf32>
    %21 = vector.broadcast %20 : f32 to vector<1x1xf32>
    %22 = arith.mulf %21, %15 : vector<1x1xf32>
    %23 = arith.mulf %3, %6 : vector<2x128xf32>
    %24 = vector.shape_cast %23 : vector<2x128xf32> to vector<1x2x128xf32>
    %cst_11 = arith.constant dense<0.000000e+00> : vector<1xf32>
    %25 = vector.multi_reduction <add>, %24, %cst_11 [1, 2] : vector<1x2x128xf32> to vector<1xf32>
    %26 = vector.shape_cast %25 : vector<1xf32> to vector<1x1x1xf32>
    %27 = vector.extract %26[0, 0, 0] : f32 from vector<1x1x1xf32>
    %28 = vector.broadcast %27 : f32 to vector<1x1xf32>
    %29 = arith.mulf %28, %15 : vector<1x1xf32>
    %30 = vector.broadcast %22 : vector<1x1xf32> to vector<2x128xf32>
    %31 = arith.subf %1, %30 : vector<2x128xf32>
    %32 = arith.mulf %31, %6 : vector<2x128xf32>
    %33 = vector.broadcast %29 : vector<1x1xf32> to vector<2x128xf32>
    %34 = arith.subf %3, %33 : vector<2x128xf32>
    %35 = arith.mulf %34, %6 : vector<2x128xf32>
    %36 = arith.mulf %32, %32 : vector<2x128xf32>
    %37 = vector.shape_cast %36 : vector<2x128xf32> to vector<1x2x128xf32>
    %cst_12 = arith.constant dense<0.000000e+00> : vector<1xf32>
    %38 = vector.multi_reduction <add>, %37, %cst_12 [1, 2] : vector<1x2x128xf32> to vector<1xf32>
    %39 = vector.shape_cast %38 : vector<1xf32> to vector<1x1x1xf32>
    %40 = vector.extract %39[0, 0, 0] : f32 from vector<1x1x1xf32>
    %41 = vector.broadcast %40 : f32 to vector<1x1xf32>
    %42 = arith.mulf %35, %35 : vector<2x128xf32>
    %43 = vector.shape_cast %42 : vector<2x128xf32> to vector<1x2x128xf32>
    %cst_13 = arith.constant dense<0.000000e+00> : vector<1xf32>
    %44 = vector.multi_reduction <add>, %43, %cst_13 [1, 2] : vector<1x2x128xf32> to vector<1xf32>
    %45 = vector.shape_cast %44 : vector<1xf32> to vector<1x1x1xf32>
    %46 = vector.extract %45[0, 0, 0] : f32 from vector<1x1x1xf32>
    %47 = vector.broadcast %46 : f32 to vector<1x1xf32>
    %48 = tpu.iota {dimensions = array<i32: 1>} : vector<8x8xi32>
    %c0_i32 = arith.constant 0 : i32
    %49 = vector.broadcast %c0_i32 : i32 to vector<8x8xi32>
    %50 = arith.cmpi eq, %48, %49 : vector<8x8xi32>
    %cst_14 = arith.constant 0.000000e+00 : f32
    %51 = vector.shape_cast %11 : vector<1x1xf32> to vector<1x1xf32>
    %52 = vector.broadcast %51 : vector<1x1xf32> to vector<8x8xf32>
    %53 = vector.broadcast %cst_14 : f32 to vector<8x8xf32>
    %54 = arith.select %50, %52, %53 : vector<8x8xi1>, vector<8x8xf32>
    %c1_i32 = arith.constant 1 : i32
    %55 = vector.broadcast %c1_i32 : i32 to vector<8x8xi32>
    %56 = arith.cmpi eq, %48, %55 : vector<8x8xi32>
    %cst_15 = arith.constant 0.000000e+00 : f32
    %57 = vector.shape_cast %22 : vector<1x1xf32> to vector<1x1xf32>
    %58 = vector.broadcast %57 : vector<1x1xf32> to vector<8x8xf32>
    %59 = vector.broadcast %cst_15 : f32 to vector<8x8xf32>
    %60 = arith.select %56, %58, %59 : vector<8x8xi1>, vector<8x8xf32>
    %61 = arith.addf %54, %60 : vector<8x8xf32>
    %c2_i32 = arith.constant 2 : i32
    %62 = vector.broadcast %c2_i32 : i32 to vector<8x8xi32>
    %63 = arith.cmpi eq, %48, %62 : vector<8x8xi32>
    %cst_16 = arith.constant 0.000000e+00 : f32
    %64 = vector.shape_cast %41 : vector<1x1xf32> to vector<1x1xf32>
    %65 = vector.broadcast %64 : vector<1x1xf32> to vector<8x8xf32>
    %66 = vector.broadcast %cst_16 : f32 to vector<8x8xf32>
    %67 = arith.select %63, %65, %66 : vector<8x8xi1>, vector<8x8xf32>
    %68 = arith.addf %61, %67 : vector<8x8xf32>
    %c3_i32 = arith.constant 3 : i32
    %69 = vector.broadcast %c3_i32 : i32 to vector<8x8xi32>
    %70 = arith.cmpi eq, %48, %69 : vector<8x8xi32>
    %cst_17 = arith.constant 0.000000e+00 : f32
    %71 = vector.shape_cast %29 : vector<1x1xf32> to vector<1x1xf32>
    %72 = vector.broadcast %71 : vector<1x1xf32> to vector<8x8xf32>
    %73 = vector.broadcast %cst_17 : f32 to vector<8x8xf32>
    %74 = arith.select %70, %72, %73 : vector<8x8xi1>, vector<8x8xf32>
    %75 = arith.addf %68, %74 : vector<8x8xf32>
    %c4_i32 = arith.constant 4 : i32
    %76 = vector.broadcast %c4_i32 : i32 to vector<8x8xi32>
    %77 = arith.cmpi eq, %48, %76 : vector<8x8xi32>
    %cst_18 = arith.constant 0.000000e+00 : f32
    %78 = vector.shape_cast %47 : vector<1x1xf32> to vector<1x1xf32>
    %79 = vector.broadcast %78 : vector<1x1xf32> to vector<8x8xf32>
    %80 = vector.broadcast %cst_18 : f32 to vector<8x8xf32>
    %81 = arith.select %77, %79, %80 : vector<8x8xi1>, vector<8x8xf32>
    %82 = arith.addf %75, %81 : vector<8x8xf32>
    %c0_19 = arith.constant 0 : index
    %c0_20 = arith.constant 0 : index
    %c0_21 = arith.constant 0 : index
    %c0_22 = arith.constant 0 : index
    %83 = vector.load %arg5[%c0_19, %c0_20, %c0_21, %c0_22] : memref<1x1x8x8xf32, #tpu.memory_space<vmem>>, vector<1x1x8x8xf32>
    %84 = vector.shape_cast %83 : vector<1x1x8x8xf32> to vector<8x8xf32>
    %85 = vector.shape_cast %82 : vector<8x8xf32> to vector<1x1x8x8xf32>
    tpu.vector_store %arg5[%c0_19, %c0_20, %c0_21, %c0_22], %85 {strides = array<i32>} : memref<1x1x8x8xf32, #tpu.memory_space<vmem>>, vector<1x1x8x8xf32>,
    return
  }
  func.func @transform_0(%arg0: i32, %arg1: i32) -> (i32, i32, i32) {
    %c0_i32 = arith.constant 0 : i32
    %c0_i32_0 = arith.constant 0 : i32
    return %arg0, %arg1, %c0_i32 : i32, i32, i32
  }
  func.func @transform_1(%arg0: i32, %arg1: i32) -> (i32, i32, i32) {
    %c0_i32 = arith.constant 0 : i32
    %c0_i32_0 = arith.constant 0 : i32
    return %arg0, %arg1, %c0_i32 : i32, i32, i32
  }
  func.func @transform_2(%arg0: i32, %arg1: i32) -> (i32, i32, i32) {
    %c0_i32 = arith.constant 0 : i32
    %c0_i32_0 = arith.constant 0 : i32
    return %arg0, %arg1, %c0_i32 : i32, i32, i32
  }
  func.func @transform_3(%arg0: i32, %arg1: i32) -> (i32, i32, i32, i32) {
    %c0_i32 = arith.constant 0 : i32
    %c0_i32_0 = arith.constant 0 : i32
    %c0_i32_1 = arith.constant 0 : i32
    return %arg0, %arg1, %c0_i32, %c0_i32_0 : i32, i32, i32, i32
  }
}

module attributes {stable_mosaic.version = 11 : i64} {
  func.func @_grad_loss_kernel(%arg0: i32, %arg1: i32, %arg2: memref<4xf32, #tpu.memory_space<smem>>, %arg3: memref<1x16x16xf32, #tpu.memory_space<vmem>>, %arg4: memref<1x16x16xf32, #tpu.memory_space<vmem>>, %arg5: memref<1x16x16xi8, #tpu.memory_space<vmem>>, %arg6: memref<1x1x8x8xf32, #tpu.memory_space<vmem>>) attributes {dimension_semantics = [#tpu.dimension_semantics<parallel>, #tpu.dimension_semantics<parallel>], iteration_bounds = array<i64: 2, 1>, scalar_prefetch = 0 : i64, scratch_operands = 0 : i64, tpu.core_type = #tpu.core_type<tc>, window_params = [{transform_indices = @transform_0, window_bounds = array<i64: 4>}, {transform_indices = @transform_1, window_bounds = array<i64: 1, 16, 16>}, {transform_indices = @transform_2, window_bounds = array<i64: 1, 16, 16>}, {transform_indices = @transform_3, window_bounds = array<i64: 1, 16, 16>}, {transform_indices = @transform_4, window_bounds = array<i64: 1, 1, 8, 8>}]} {
    %c0 = arith.constant 0 : index
    %0 = memref.load %arg2[%c0] : memref<4xf32, #tpu.memory_space<smem>>
    %c1 = arith.constant 1 : index
    %1 = memref.load %arg2[%c1] : memref<4xf32, #tpu.memory_space<smem>>
    %c2 = arith.constant 2 : index
    %2 = memref.load %arg2[%c2] : memref<4xf32, #tpu.memory_space<smem>>
    %c3 = arith.constant 3 : index
    %3 = memref.load %arg2[%c3] : memref<4xf32, #tpu.memory_space<smem>>
    %c0_0 = arith.constant 0 : index
    %c0_1 = arith.constant 0 : index
    %c0_2 = arith.constant 0 : index
    %4 = vector.load %arg3[%c0_0, %c0_1, %c0_2] : memref<1x16x16xf32, #tpu.memory_space<vmem>>, vector<1x16x16xf32>
    %5 = vector.shape_cast %4 : vector<1x16x16xf32> to vector<16x16xf32>
    %c0_3 = arith.constant 0 : index
    %c0_4 = arith.constant 0 : index
    %c0_5 = arith.constant 0 : index
    %6 = vector.load %arg4[%c0_3, %c0_4, %c0_5] : memref<1x16x16xf32, #tpu.memory_space<vmem>>, vector<1x16x16xf32>
    %7 = vector.shape_cast %6 : vector<1x16x16xf32> to vector<16x16xf32>
    %c0_6 = arith.constant 0 : index
    %c0_7 = arith.constant 0 : index
    %c0_8 = arith.constant 0 : index
    %8 = vector.load %arg5[%c0_6, %c0_7, %c0_8] : memref<1x16x16xi8, #tpu.memory_space<vmem>>, vector<1x16x16xi8>
    %9 = vector.shape_cast %8 : vector<1x16x16xi8> to vector<16x16xi8>
    %10 = arith.uitofp %9 : vector<16x16xi8> to vector<16x16xf32>
    %11 = vector.broadcast %0 : f32 to vector<16x16xf32>
    %12 = arith.subf %5, %11 : vector<16x16xf32>
    %13 = vector.broadcast %1 : f32 to vector<16x16xf32>
    %14 = arith.mulf %12, %13 : vector<16x16xf32>
    %15 = vector.broadcast %2 : f32 to vector<16x16xf32>
    %16 = arith.subf %7, %15 : vector<16x16xf32>
    %17 = vector.broadcast %3 : f32 to vector<16x16xf32>
    %18 = arith.mulf %16, %17 : vector<16x16xf32>
    %19 = arith.subf %14, %18 : vector<16x16xf32>
    %20 = arith.mulf %19, %10 : vector<16x16xf32>
    %21 = vector.extract_strided_slice %20 {offsets = [0, 0], sizes = [14, 16], strides = [1, 1]} : vector<16x16xf32> to vector<14x16xf32>
    %22 = vector.extract_strided_slice %20 {offsets = [2, 0], sizes = [14, 16], strides = [1, 1]} : vector<16x16xf32> to vector<14x16xf32>
    %23 = arith.subf %21, %22 : vector<14x16xf32>
    %24 = math.absf %23 : vector<14x16xf32>
    %25 = vector.extract_strided_slice %10 {offsets = [0, 0], sizes = [14, 16], strides = [1, 1]} : vector<16x16xf32> to vector<14x16xf32>
    %26 = vector.extract_strided_slice %10 {offsets = [2, 0], sizes = [14, 16], strides = [1, 1]} : vector<16x16xf32> to vector<14x16xf32>
    %27 = arith.mulf %25, %26 : vector<14x16xf32>
    %28 = arith.mulf %24, %27 : vector<14x16xf32>
    %29 = vector.shape_cast %28 : vector<14x16xf32> to vector<1x14x16xf32>
    %cst = arith.constant dense<0.000000e+00> : vector<1xf32>
    %30 = vector.multi_reduction <add>, %29, %cst [1, 2] : vector<1x14x16xf32> to vector<1xf32>
    %31 = vector.shape_cast %30 : vector<1xf32> to vector<1x1x1xf32>
    %32 = vector.extract %31[0, 0, 0] : f32 from vector<1x1x1xf32>
    %33 = vector.broadcast %32 : f32 to vector<1x1xf32>
    %34 = vector.extract_strided_slice %20 {offsets = [0, 0], sizes = [16, 14], strides = [1, 1]} : vector<16x16xf32> to vector<16x14xf32>
    %35 = vector.extract_strided_slice %20 {offsets = [0, 2], sizes = [16, 14], strides = [1, 1]} : vector<16x16xf32> to vector<16x14xf32>
    %36 = arith.subf %34, %35 : vector<16x14xf32>
    %37 = math.absf %36 : vector<16x14xf32>
    %38 = vector.extract_strided_slice %10 {offsets = [0, 0], sizes = [16, 14], strides = [1, 1]} : vector<16x16xf32> to vector<16x14xf32>
    %39 = vector.extract_strided_slice %10 {offsets = [0, 2], sizes = [16, 14], strides = [1, 1]} : vector<16x16xf32> to vector<16x14xf32>
    %40 = arith.mulf %38, %39 : vector<16x14xf32>
    %41 = arith.mulf %37, %40 : vector<16x14xf32>
    %42 = vector.shape_cast %41 : vector<16x14xf32> to vector<1x16x14xf32>
    %cst_9 = arith.constant dense<0.000000e+00> : vector<1xf32>
    %43 = vector.multi_reduction <add>, %42, %cst_9 [1, 2] : vector<1x16x14xf32> to vector<1xf32>
    %44 = vector.shape_cast %43 : vector<1xf32> to vector<1x1x1xf32>
    %45 = vector.extract %44[0, 0, 0] : f32 from vector<1x1x1xf32>
    %46 = vector.broadcast %45 : f32 to vector<1x1xf32>
    %47 = arith.addf %33, %46 : vector<1x1xf32>
    %48 = vector.shape_cast %47 : vector<1x1xf32> to vector<1x1xf32>
    %49 = vector.broadcast %48 : vector<1x1xf32> to vector<8x8xf32>
    %c0_10 = arith.constant 0 : index
    %c0_11 = arith.constant 0 : index
    %c0_12 = arith.constant 0 : index
    %c0_13 = arith.constant 0 : index
    %50 = vector.load %arg6[%c0_10, %c0_11, %c0_12, %c0_13] : memref<1x1x8x8xf32, #tpu.memory_space<vmem>>, vector<1x1x8x8xf32>
    %51 = vector.shape_cast %50 : vector<1x1x8x8xf32> to vector<8x8xf32>
    %52 = vector.shape_cast %49 : vector<8x8xf32> to vector<1x1x8x8xf32>
    tpu.vector_store %arg6[%c0_10, %c0_11, %c0_12, %c0_13], %52 {strides = array<i32>} : memref<1x1x8x8xf32, #tpu.memory_space<vmem>>, vector<1x1x8x8xf32>,
    return
  }
  func.func @transform_0(%arg0: i32, %arg1: i32) -> i32 {
    %c0_i32 = arith.constant 0 : i32
    %c0_i32_0 = arith.constant 0 : i32
    return %c0_i32 : i32
  }
  func.func @transform_1(%arg0: i32, %arg1: i32) -> (i32, i32, i32) {
    %c0_i32 = arith.constant 0 : i32
    %c0_i32_0 = arith.constant 0 : i32
    return %arg0, %arg1, %c0_i32 : i32, i32, i32
  }
  func.func @transform_2(%arg0: i32, %arg1: i32) -> (i32, i32, i32) {
    %c0_i32 = arith.constant 0 : i32
    %c0_i32_0 = arith.constant 0 : i32
    return %arg0, %arg1, %c0_i32 : i32, i32, i32
  }
  func.func @transform_3(%arg0: i32, %arg1: i32) -> (i32, i32, i32) {
    %c0_i32 = arith.constant 0 : i32
    %c0_i32_0 = arith.constant 0 : i32
    return %arg0, %arg1, %c0_i32 : i32, i32, i32
  }
  func.func @transform_4(%arg0: i32, %arg1: i32) -> (i32, i32, i32, i32) {
    %c0_i32 = arith.constant 0 : i32
    %c0_i32_0 = arith.constant 0 : i32
    %c0_i32_1 = arith.constant 0 : i32
    return %arg0, %arg1, %c0_i32, %c0_i32_0 : i32, i32, i32, i32
  }
}

</mosaic_0001>

<bundles_post_ra>
// kernel: squeeze.16
= control target key start
LH: loop header
LB: loop body
LE: loop exit
PB: predicated region body
PF: predicated region fallthrough
CT: control target
= control target key end

     0   :  { %s89_s8 = smov 112   ;;  %s90_s11 = smov 80   ;;  %vm3_vm0 = vcmask 130048   ;;  %vm11_vm1 = vcmask 1048448   ;;  %vm19_vm2 = vcmask 917248   ;;  %vm27_vm3 = vcmask 786048   ;;  %s136_s0 = inlined_call_operand.vmem [shape: f32[2,1,16,16], index: 0, kind: input, shape index: {}]   ;;  %s137_s1 = inlined_call_operand.vmem [shape: f32[2,2,128], index: 1, kind: output, shape index: {}]  }
   0x1   :  { %v74_v0 = vld [vmem:[%s136_s0 + $0x7] ss:$8 sm:$0xf]   ;;  %v76_v1 = vld [vmem:[%s136_s0 + $0x5] ss:$8 sm:$0xf]  }
   0x2   :  { %9 = vrot.lane.b32.xlu0 %v74_v0, %s89_s8  ;;  %25 = vrot.lane.b32.xlu1 %v76_v1, %s90_s11  ;;  %v75_v2 = vld [vmem:[%s136_s0 + $0x6] ss:$8 sm:$0xf]   ;;  %v77_v3 = vld [vmem:[%s136_s0 + $0x4] ss:$8 sm:$0xf]  }
   0x3   :  { %s91_s16 = smov 96   ;;  %v2_v4 = vld [vmem:[%s136_s0] ss:$8 sm:$0xf]   ;;  %s92_s19 = smov 64   ;;  %vm35_vm4 = vcmask 654848  }
   0x4   :  { %v78_v5 = vld [vmem:[%s136_s0 + $0x3] ss:$8 sm:$0xf]   ;;  %4 = vst.msk [vmem:[#allocation0] sm:$0x3] %vm3_vm0, %v2_v4   ;;  %s93_s24 = smov 48  }
   0x5   :  { %6 = vst.msk [vmem:[#allocation0 + $0x6] sm:$0xc] %vm3_vm0, %v2_v4   ;;  %v79_v6 = vld [vmem:[%s136_s0 + $0x2] ss:$8 sm:$0xf]   ;;  %s94_s25 = smov 32  }
   0x6   :  { %17 = vrot.lane.b32.xlu0 %v75_v2, %s91_s16  ;;  %33 = vrot.lane.b32.xlu1 %v77_v3, %s92_s19  ;;  %v80_v7 = vld [vmem:[%s136_s0 + $0x1] ss:$8 sm:$0xf]   ;;  %s95_s0 = smov 16   ;;  %vm43_vm5 = vcmask 523648   ;;  %vm51_vm6 = vcmask 392448  }
   0x7   :  { %vm59_vm7 = vcmask 261248  }
   0xa   :  { %41 = vrot.lane.b32.xlu0 %v78_v5, %s93_s24  ;;  %49 = vrot.lane.b32.xlu1 %v79_v6, %s94_s25 }
   0xe   :  { %57 = vrot.lane.b32.xlu0 %v80_v7, %s95_s0 }
  0x74   :  { %v10_v8 = vpop.permute.xlu0 %9   ;;  %v26_v9 = vpop.permute.xlu1 %25  }
  0x75   :  { %12 = vst.msk [vmem:[#allocation0] sm:$0x3] %vm11_vm1, %v10_v8   ;;  %14 = vst.msk [vmem:[#allocation0 + $0x6] sm:$0xc] %vm11_vm1, %v10_v8  }
  0x78   :  { %v18_v10 = vpop.permute.xlu0 %17   ;;  %v34_v11 = vpop.permute.xlu1 %33  }
  0x79   :  { %20 = vst.msk [vmem:[#allocation0] sm:$0x3] %vm19_vm2, %v18_v10   ;;  %22 = vst.msk [vmem:[#allocation0 + $0x6] sm:$0xc] %vm19_vm2, %v18_v10  }
  0x7a   :  { %28 = vst.msk [vmem:[#allocation0] sm:$0x3] %vm27_vm3, %v26_v9   ;;  %30 = vst.msk [vmem:[#allocation0 + $0x6] sm:$0xc] %vm27_vm3, %v26_v9  }
  0x7b   :  { %36 = vst.msk [vmem:[#allocation0] sm:$0x3] %vm35_vm4, %v34_v11   ;;  %38 = vst.msk [vmem:[#allocation0 + $0x6] sm:$0xc] %vm35_vm4, %v34_v11  }
  0x7c   :  { %v42_v12 = vpop.permute.xlu0 %41   ;;  %v50_v13 = vpop.permute.xlu1 %49  }
  0x7d   :  { %44 = vst.msk [vmem:[#allocation0] sm:$0x3] %vm43_vm5, %v42_v12   ;;  %46 = vst.msk [vmem:[#allocation0 + $0x6] sm:$0xc] %vm43_vm5, %v42_v12  }
  0x7e   :  { %52 = vst.msk [vmem:[#allocation0] sm:$0x3] %vm51_vm6, %v50_v13   ;;  %54 = vst.msk [vmem:[#allocation0 + $0x6] sm:$0xc] %vm51_vm6, %v50_v13  }
  0x80   :  { %v58_v14 = vpop.permute.xlu0 %57  }
  0x81   :  { %60 = vst.msk [vmem:[#allocation0] sm:$0x3] %vm59_vm7, %v58_v14   ;;  %62 = vst.msk [vmem:[#allocation0 + $0x6] sm:$0xc] %vm59_vm7, %v58_v14  }
  0x88   :  { %v66_v15 = vld [vmem:[#allocation0] sm:$0x3]  ;;  %v70_v16 = vld [vmem:[#allocation0 + $0x8] sm:$0x3] }
  0x89   :  { %68 = vst [vmem:[%s137_s1] sm:$0x3] %v66_v15  ;;  %81 = vst [vmem:[%s137_s1 + $0x2] sm:$0x3] %v70_v16 }

// kernel: squeeze.15
= control target key start
LH: loop header
LB: loop body
LE: loop exit
PB: predicated region body
PF: predicated region fallthrough
CT: control target
= control target key end

     0   :  { %2 = vsyncpa [#allocation1], 0  ;;  %s118_s6 = smov [#allocation0]   ;;  %s154_s0 = inlined_call_operand.hbm [shape: f32[2,1,16,16], index: 0, kind: input, shape index: {}]   ;;  %s155_s1 = inlined_call_operand.vmem [shape: f32[2,2,128], index: 1, kind: output, shape index: {}]  }
   0x1   :  { %s7_s7 = sshll.u32 %s118_s6, 4  ;;  %s94_s10 = scalar_lea.hbm %s154_s0, 512  ;;  %s8_s7 = int_to_ptr.vmem [resolvable:$true] %s7_s7 }
   0x2   :  { %p95_p0 = scmp.ne.s32.totalorder %s154_s0, %s94_s10  ;;  %p98_p1 = scmp.lt.u32.totalorder %s94_s10, %s154_s0 }
   0x4   :  { %p100_p2 = pnand %p98_p1, %p95_p0 }
   0x6   :  { %103 = shalt.err (!%p100_p2)
}
   0x7   :  { %s104_s15 = scalar_lea.vmem %s8_s7, 512  ;;  %p109_p4 = scmp.lt.s32.totalorder %s8_s7, %s8_s7 }
   0x8   :  { %p105_p3 = scmp.ne.s32.totalorder %s8_s7, %s104_s15  ;;  %p110_p5 = scmp.lt.s32.totalorder %s104_s15, %s104_s15 }
   0xa   :  { %p111_p6 = por %p110_p5, %p109_p4 }
   0xc   :  { %p112_p7 = pnand %p111_p6, %p105_p3 }
   0xe   :  { %115 = shalt.err (!%p112_p7)
}
   0xf   :  { %10 = dma.hbm_to_vmem [thread:$0]  %s154_s0, 512, %s8_s7, [#allocation1]  }
  0x10   :  { %116 = dma.done.wait [#allocation1], 512  }
  0x11   :  { %117 = vsyncadd [#allocation1], 4294966784  ;;  %v18_v0 = vld [vmem:[#allocation0 + $0x7] ss:$8 sm:$0xf]   ;;  %s119_s0 = smov 112  }
  0x12   :  { %v34_v1 = vld [vmem:[#allocation0 + $0x5] ss:$8 sm:$0xf]   ;;  %19 = vrot.lane.b32.xlu0 %v18_v0, %s119_s0  ;;  %s120_s18 = smov 80   ;;  %vm13_vm0 = vcmask 130048   ;;  %s121_s19 = smov 96  }
  0x13   :  { %35 = vrot.lane.b32.xlu1 %v34_v1, %s120_s18  ;;  %v26_v2 = vld [vmem:[#allocation0 + $0x6] ss:$8 sm:$0xf]   ;;  %v42_v3 = vld [vmem:[#allocation0 + $0x4] ss:$8 sm:$0xf]  }
  0x14   :  { %v12_v4 = vld [vmem:[#allocation0] ss:$8 sm:$0xf]   ;;  %s122_s20 = smov 64   ;;  %s123_s21 = smov 48   ;;  %vm21_vm1 = vcmask 1048448  }
  0x15   :  { %14 = vst.msk [vmem:[#allocation2] sm:$0x3] %vm13_vm0, %v12_v4   ;;  %16 = vst.msk [vmem:[#allocation2 + $0x6] sm:$0xc] %vm13_vm0, %v12_v4   ;;  %s124_s22 = smov 32   ;;  %s125_s23 = smov 16  }
  0x16   :  { %27 = vrot.lane.b32.xlu0 %v26_v2, %s121_s19  ;;  %v50_v5 = vld [vmem:[#allocation0 + $0x3] ss:$8 sm:$0xf]   ;;  %v58_v6 = vld [vmem:[#allocation0 + $0x2] ss:$8 sm:$0xf]  }
  0x17   :  { %43 = vrot.lane.b32.xlu1 %v42_v3, %s122_s20  ;;  %v66_v7 = vld [vmem:[#allocation0 + $0x1] ss:$8 sm:$0xf]   ;;  %vm29_vm2 = vcmask 917248   ;;  %vm37_vm3 = vcmask 786048   ;;  %vm45_vm4 = vcmask 654848  }
  0x18   :  { %vm53_vm5 = vcmask 523648   ;;  %vm61_vm6 = vcmask 392448   ;;  %vm69_vm7 = vcmask 261248  }
  0x1a   :  { %51 = vrot.lane.b32.xlu0 %v50_v5, %s123_s21 }
  0x1b   :  { %59 = vrot.lane.b32.xlu1 %v58_v6, %s124_s22 }
  0x1e   :  { %67 = vrot.lane.b32.xlu0 %v66_v7, %s125_s23 }
  0x84   :  { %v20_v8 = vpop.permute.xlu0 %19  }
  0x85   :  { %v36_v9 = vpop.permute.xlu1 %35   ;;  %22 = vst.msk [vmem:[#allocation2] sm:$0x3] %vm21_vm1, %v20_v8   ;;  %24 = vst.msk [vmem:[#allocation2 + $0x6] sm:$0xc] %vm21_vm1, %v20_v8  }
  0x88   :  { %v28_v10 = vpop.permute.xlu0 %27  }
  0x89   :  { %v44_v11 = vpop.permute.xlu1 %43   ;;  %30 = vst.msk [vmem:[#allocation2] sm:$0x3] %vm29_vm2, %v28_v10   ;;  %32 = vst.msk [vmem:[#allocation2 + $0x6] sm:$0xc] %vm29_vm2, %v28_v10  }
  0x8a   :  { %38 = vst.msk [vmem:[#allocation2] sm:$0x3] %vm37_vm3, %v36_v9   ;;  %40 = vst.msk [vmem:[#allocation2 + $0x6] sm:$0xc] %vm37_vm3, %v36_v9  }
  0x8b   :  { %46 = vst.msk [vmem:[#allocation2] sm:$0x3] %vm45_vm4, %v44_v11   ;;  %48 = vst.msk [vmem:[#allocation2 + $0x6] sm:$0xc] %vm45_vm4, %v44_v11  }
  0x8c   :  { %v52_v12 = vpop.permute.xlu0 %51  }
  0x8d   :  { %v60_v13 = vpop.permute.xlu1 %59   ;;  %54 = vst.msk [vmem:[#allocation2] sm:$0x3] %vm53_vm5, %v52_v12   ;;  %56 = vst.msk [vmem:[#allocation2 + $0x6] sm:$0xc] %vm53_vm5, %v52_v12  }
  0x8e   :  { %62 = vst.msk [vmem:[#allocation2] sm:$0x3] %vm61_vm6, %v60_v13   ;;  %64 = vst.msk [vmem:[#allocation2 + $0x6] sm:$0xc] %vm61_vm6, %v60_v13  }
  0x90   :  { %v68_v14 = vpop.permute.xlu0 %67  }
  0x91   :  { %70 = vst.msk [vmem:[#allocation2] sm:$0x3] %vm69_vm7, %v68_v14   ;;  %72 = vst.msk [vmem:[#allocation2 + $0x6] sm:$0xc] %vm69_vm7, %v68_v14  }
  0x98   :  { %v76_v15 = vld [vmem:[#allocation2] sm:$0x3]  ;;  %v80_v16 = vld [vmem:[#allocation2 + $0x8] sm:$0x3] }
  0x99   :  { %78 = vst [vmem:[%s155_s1] sm:$0x3] %v76_v15  ;;  %85 = vst [vmem:[%s155_s1 + $0x2] sm:$0x3] %v80_v16 }
  0x9a   :  { %84 = vsyncpa [#allocation1], 1 }

// kernel: scale_and_shift_invariant_da_loss.3
= control target key start
LH: loop header
LB: loop body
LE: loop exit
PB: predicated region body
PF: predicated region fallthrough
CT: control target
= control target key end

     0   :  { %9 = vsyncpa [#allocation3], 0  ;;  %s687_s15 = smov 0   ;;  %s689_s16 = smov 0   ;;  %s757_s0 = inlined_call_operand.vmem [shape: f32[4], index: 0, kind: input, shape index: {}]   ;;  %s758_s1 = inlined_call_operand.vmem [shape: f32[2,16,16], index: 1, kind: input, shape index: {}]   ;;  %s759_s2 = inlined_call_operand.vmem [shape: f32[2,16,16], index: 2, kind: input, shape index: {}]   ;;  %s760_s3 = inlined_call_operand.vmem [shape: u8[2,16,16], index: 3, kind: input, shape index: {}]   ;;  %s761_s4 = inlined_call_operand.vmem [shape: f32[2,1,8,8], index: 4, kind: output, shape index: {}]  }
   0x1   :  { %s691_s17 = smov 0  }
   0x2 LB: > { %s551_s18 = sadd.s32 4294967295, %s658_s17   ;;  %s27_s19 = sadd.s32 1, %s654_s16  ;;  %s658_s17 = sphi %s691_s17, %s15_s17   ;;  %s654_s16 = sphi %s689_s16, %s765_s16   ;;  %s650_s15 = sphi %s687_s15, %s764_s15  }
   0x3   : > { %p29_p0 = scmp.ge.s32.totalorder %s27_s19, 2  ;;  %p553_p1 = scmp.ge.s32.totalorder %s658_s17, 1 }
   0x4   : > { %p165_p2 = scmp.lt.s32.totalorder %s658_s17, 3  ;;  %p712_p4 = scmp.eq.s32.totalorder %s551_s18, 0 }
   0x5   : > { %s767_s19 = smov (%p29_p0, %s27_s19), 0  ;;  %s178_s24 = sshll.u32 %s757_s0, 4  ;;  %s179_s24 = int_to_ptr.vmem [resolvable:$true] %s178_s24 }
   0x6   : > { %p708_p3 = pnand %p553_p1, %p165_p2  ;;  %s617_s25 = scalar_lea.vmem %s179_s24, 16 }
   0x7   : > { %p618_p7 = scmp.ne.s32.totalorder %s179_s24, %s617_s25  ;;  %p625_p11 = scmp.lt.s32.totalorder %s179_s24, %s179_s24 }
   0x8   : > { %p585_p5 = pneg %p708_p3  ;;  %p626_p12 = scmp.lt.s32.totalorder %s617_s25, %s617_s25 }
   0xa   : > { %p586_p6 = pnand %p712_p4, %p585_p5  ;;  %p627_p13 = por %p626_p12, %p625_p11 }
   0xc   : > { %p619_p8 = pneg %p586_p6 }
   0xe   : > { %p620_p9 = pnand %p619_p8, %p618_p7 }
  0x10   : > { %p621_p10 = pneg %p620_p9 }
  0x12   : > { %p628_p0 = pnand %p627_p13, %p621_p10 }
  0x14   : > { %631 = shalt.err (!%p628_p0)
}
  0x15   : > { %s660_s26 = smov [#allocation2]   ;;  %230 = sbr.rel (%p708_p3) target bundleno = 383 (0x17f), region = 36 }
  0x16   : > { %588 = dma.vmem_to_smem (!%p586_p6), %s179_s24, 16, %s660_s26, [#allocation3]  }
  0x1c   : > { %645 = dma.done.wait (%p712_p4), [#allocation3], 16  }
  0x1d   : > { %647 = vsyncadd (%p712_p4), [#allocation3], 4294967280 }
  0x1e   : > { %236 = sfence }
  0x1f   : > { %p282_p1 = scmp.lt.s32.totalorder %s650_s15, 1  ;;  %s318_s27 = sld [smem:[#allocation2]]  ;;  %vm352_vm0 = vcmask 1045504   ;;  %vm373_vm1 = vcmask 130048   ;;  %vm375_vm2 = vcmask 128000   ;;  %vm408_vm3 = vcmask 113664  }
  0x20   : > { %s565_s28 = sld [smem:[#allocation2 + $0x1]]  ;;  %s566_s29 = sld [smem:[#allocation2 + $0x2]]  ;;  %vm423_vm4 = vcmask 64512  }
  0x21   : > { %s769_s15 = smov (!%p282_p1, %s650_s15), 1  ;;  %s567_s30 = sld [smem:[#allocation2 + $0x3]] }
  0x22   : > { %s570_s5 = sshll.u32 %s769_s15, 4  ;;  %s572_s6 = sshll.u32 %s769_s15, 2 }
  0x23   : > { %s289_s9 = scalar_lea.vmem %s758_s1, %s570_s5  ;;  %s299_s12 = scalar_lea.vmem %s759_s2, %s570_s5 }
  0x24   : > { %s309_s18 = scalar_lea.vmem %s760_s3, %s572_s6  ;;  %v322_v0 = vld [vmem:[%s289_s9] sm:$0xff]  ;;  %v323_v3 = vld [vmem:[%s289_s9 + $0x8] sm:$0xff]  ;;  %s661_s20 = smov 126  }
  0x25   : > { %v324_v1 = vld [vmem:[%s299_s12] sm:$0xff]  ;;  %v334_v2 = vstv %s318_s27  ;;  %v325_v8 = vld [vmem:[%s299_s12 + $0x8] sm:$0xff]  ;;  %s564_s22 = sshll.u32 %s769_s15, 3 }
  0x26   : > { %v574_v4 = vld [vmem:[%s309_s18] sm:$0xf]   ;;  %v335_v5 = vsub.f32 %v322_v0, %v334_v2  ;;  %v337_v6 = vstv %s565_s28  ;;  %v340_v7 = vstv %s566_s29  ;;  %v336_v9 = vsub.f32 %v323_v3, %v334_v2  ;;  %s317_s26 = scalar_lea.vmem %s761_s4, %s564_s22 }
  0x27   : > { %v575_v10 = vunpack.c.0.s8 %v574_v4  ;;  %v341_v11 = vsub.f32 %v324_v1, %v340_v7  ;;  %v576_v12 = vunpack.c.1.s8 %v574_v4  ;;  %v342_v13 = vsub.f32 %v325_v8, %v340_v7 }
  0x28   : > { %v338_v14 = vmul.f32 %v337_v6, %v335_v5  ;;  %v343_v15 = vstv %s567_s30  ;;  %v339_v16 = vmul.f32 %v337_v6, %v336_v9 }
  0x29   : > { %v330_v17 = vand.u32 255, %v575_v10  ;;  %v344_v18 = vmul.f32 %v343_v15, %v341_v11  ;;  %v331_v19 = vand.u32 255, %v576_v12  ;;  %v345_v20 = vmul.f32 %v343_v15, %v342_v13 }
  0x2b   : > { %v332_v21 = vcvt.s32.f32 %v330_v17  ;;  %v346_v22 = vsub.f32 %v338_v14, %v344_v18  ;;  %v333_v23 = vcvt.s32.f32 %v331_v19  ;;  %v347_v24 = vsub.f32 %v339_v16, %v345_v20 }
  0x2d   : > { %v348_v25 = vmul.f32 %v346_v22, %v332_v21  ;;  %398 = vrot.lane.b32.xlu1 %v332_v21, %s661_s20  ;;  %v349_v26 = vmul.f32 %v347_v24, %v333_v23  ;;  %v364_v30 = vrot.slane %v332_v21, 2  ;;  %v365_v31 = vrot.slane %v333_v23, 2 }
  0x2f   : > { %388 = vrot.lane.b32.xlu0 %v348_v25, %s661_s20  ;;  %v353_v27 = vrot.slane %v348_v25, 2  ;;  %v354_v28 = vrot.slane %v349_v26, 2  ;;  %v366_v34 = vsel %vm352_vm0, %v364_v30, %v365_v31  ;;  %v370_v38 = vmul.f32 %v365_v31, %v333_v23 }
  0x30   : > { %v369_v37 = vmul.f32 %v366_v34, %v332_v21 }
  0x31   : > { %400 = vrot.lane.b32.xlu1 %v333_v23, %s661_s20  ;;  %v355_v29 = vsel %vm352_vm0, %v353_v27, %v354_v28  ;;  %v359_v33 = vsub.f32 %v349_v26, %v354_v28 }
  0x32   : > { %v358_v32 = vsub.f32 %v348_v25, %v355_v29 }
  0x33   : > { %390 = vrot.lane.b32.xlu0 %v349_v26, %s661_s20  ;;  %v361_v36 = vand.u32 2147483647, %v359_v33 }
  0x34   : > { %v360_v35 = vand.u32 2147483647, %v358_v32 }
  0x35   : > { %v372_v40 = vmul.f32 %v370_v38, %v361_v36 }
  0x36   : > { %v371_v39 = vmul.f32 %v369_v37, %v360_v35 }
  0x37   : > { %v376_v42 = vsel %vm375_vm2, %v372_v40, 0.0 }
  0x38   : > { %v374_v41 = vsel %vm373_vm1, %v371_v39, 0.0 }
  0x39   : > { %v377_v43 = vadd.f32 %v376_v42, %v374_v41 }
  0x52   : > { %378 = vadd.xlane.f32.xlu0 %v377_v43 }
  0x9f   : > { %v399_v44 = vpop.permute.xlu1 %398 }
  0xa0   : > { %v404_v49 = vmul.f32 %v399_v44, %v332_v21 }
  0xa1   : > { %v389_v45 = vpop.permute.xlu0 %388 }
  0xa2   : > { %v394_v46 = vsub.f32 %v348_v25, %v389_v45 }
  0xa3   : > { %v401_v47 = vpop.permute.xlu1 %400 }
  0xa4   : > { %v396_v48 = vand.u32 2147483647, %v394_v46  ;;  %v405_v52 = vmul.f32 %v401_v47, %v333_v23 }
  0xa5   : > { %v391_v50 = vpop.permute.xlu0 %390 }
  0xa6   : > { %v395_v51 = vsub.f32 %v349_v26, %v391_v50  ;;  %v406_v53 = vmul.f32 %v404_v49, %v396_v48 }
  0xa8   : > { %v397_v54 = vand.u32 2147483647, %v395_v51  ;;  %v409_v56 = vsel %vm408_vm3, %v406_v53, 0.0 }
  0xaa   : > { %v407_v55 = vmul.f32 %v405_v52, %v397_v54 }
  0xac   : > { %v410_v57 = vsel %vm408_vm3, %v407_v55, 0.0 }
  0xad   : > { %v411_v58 = vadd.f32 %v410_v57, %v409_v56 }
  0xaf   : > { %412 = vadd.xlane.f32.xlu1 %v411_v58 }
  0xdf   : > { %v379_v59 = vpop.xlane.xlu0 %378 }
  0xe0   : > { %v380_v60 = vrot.slane %v379_v59, 4 }
  0xe2   : > { %v381_v61 = vadd.f32 %v380_v60, %v379_v59 }
  0xe4   : > { %v382_v62 = vrot.slane %v381_v61, 2 }
  0xe6   : > { %v383_v63 = vadd.f32 %v382_v62, %v381_v61 }
  0xe8   : > { %v384_v0 = vrot.slane %v383_v63, 1 }
  0xea   : > { %v385_v1 = vadd.f32 %v384_v0, %v383_v63 }
  0xec   : > { %577 = vpush %v385_v1 }
 0x11d   : > { %s578_s21 = spop %577 }
 0x11e   : > { %v387_v9 = vstv %s578_s21 }
 0x13c   : > { %v413_v2 = vpop.xlane.xlu1 %412 }
 0x13d   : > { %v414_v3 = vrot.slane %v413_v2, 4 }
 0x13f   : > { %v415_v4 = vadd.f32 %v414_v3, %v413_v2 }
 0x141   : > { %v416_v5 = vrot.slane %v415_v4, 2 }
 0x143   : > { %v417_v6 = vadd.f32 %v416_v5, %v415_v4 }
 0x145   : > { %v418_v7 = vrot.slane %v417_v6, 1 }
 0x147   : > { %v419_v8 = vadd.f32 %v418_v7, %v417_v6 }
 0x149   : > { %579 = vpush %v419_v8 }
 0x17a   : > { %s580_s23 = spop %579 }
 0x17b   : > { %v421_v10 = vstv %s580_s23 }
 0x17c   : > { %v422_v11 = vadd.f32 %v421_v10, %v387_v9 }
 0x17e   : > { %424 = vst.msk [vmem:[%s317_s26] sm:$0xff] %vm423_vm4, %v422_v11 }
 0x17f PF: > { %s15_s17 = sadd.s32 1, %s658_s17   ;;  %s764_s15 = smov %s654_s16 }
 0x180   : > { %p12_p2 = scmp.ge.s32.totalorder %s15_s17, 4   ;;  %s765_s16 = smov %s767_s19 }
 0x182   :  { %14 = sbr.rel (!%p12_p2) target bundleno = 2 (0x2), region = 77 }
 0x189   :  { %450 = vsyncpa [#allocation3], 1 }
 0x18a   :  { %452 = vsyncpa [#allocation3 + $0x1], 1 }

// kernel: scale_and_shift_invariant_da_loss.2
= control target key start
LH: loop header
LB: loop body
LE: loop exit
PB: predicated region body
PF: predicated region fallthrough
CT: control target
= control target key end

     0   :  { %s534_s12 = smov 0   ;;  %s536_s13 = smov 0   ;;  %s583_s0 = inlined_call_operand.vmem [shape: f32[2,2,128], index: 0, kind: input, shape index: {}]   ;;  %s584_s1 = inlined_call_operand.vmem [shape: f32[2,2,128], index: 1, kind: input, shape index: {}]   ;;  %s585_s2 = inlined_call_operand.vmem [shape: u8[2,2,128], index: 2, kind: input, shape index: {}]   ;;  %s586_s3 = inlined_call_operand.vmem [shape: f32[2,1,8,8], index: 3, kind: output, shape index: {}]  }
   0x1   :  { %s538_s14 = smov 0  }
   0x2 LB: > { %s25_s15 = sadd.s32 1, %s508_s13  ;;  %p448_p0 = scmp.ge.s32.totalorder %s512_s14, 1  ;;  %s512_s14 = sphi %s538_s14, %s13_s14   ;;  %s508_s13 = sphi %s536_s13, %s588_s13   ;;  %s504_s12 = sphi %s534_s12, %s587_s12  }
   0x3   : > { %p27_p1 = scmp.ge.s32.totalorder %s25_s15, 2  ;;  %p182_p2 = scmp.lt.s32.totalorder %s512_s14, 3 }
   0x5   : > { %s590_s15 = smov (%p27_p1, %s25_s15), 0  ;;  %p183_p3 = pnand %p448_p0, %p182_p2 }
   0x6   : > { %p223_p4 = scmp.lt.s32.totalorder (!%p183_p3), %s504_s12, 1  ;;  %vm256_vm0 = vcmask (!%p183_p3), 1041408   ;;  %v323_v34 = vlaneseq (!%p183_p3)  ;;  %vm341_vm6 = vcmask (!%p183_p3), 64512  }
   0x7   : > { %186 = sbr.rel (%p183_p3) target bundleno = 464 (0x1d0), region = 32 }
   0x8   : > { %v324_v35 = vand.u32 (!%p183_p3), 127, %v323_v34 }
   0xa   : > { %vm325_vm1 = vcmp.eq.s32.totalorder (!%p183_p3), %v324_v35, 0  ;;  %vm327_vm2 = vcmp.eq.s32.totalorder (!%p183_p3), %v324_v35, 1  ;;  %vm330_vm3 = vcmp.eq.s32.totalorder (!%p183_p3), %v324_v35, 2  ;;  %vm334_vm4 = vcmp.eq.s32.totalorder (!%p183_p3), %v324_v35, 3 }
   0xb   : > { %vm337_vm5 = vcmp.eq.s32.totalorder (!%p183_p3), %v324_v35, 4 }
   0xe   : > { %s592_s12 = smov (!%p223_p4, %s504_s12), 1 }
   0xf   : > { %s242_s18 = scalar_lea.vmem %s585_s2, %s592_s12  ;;  %s449_s19 = sshll.u32 %s592_s12, 1 }
  0x10   : > { %v252_v0 = vld [vmem:[%s242_s18] sm:$0x1]  ;;  %s229_s22 = scalar_lea.vmem %s583_s0, %s449_s19  ;;  %s236_s25 = scalar_lea.vmem %s584_s1, %s449_s19 }
  0x11   : > { %v253_v1 = vunpack.c.0.s8 %v252_v0  ;;  %v250_v3 = vld [vmem:[%s229_s22] sm:$0x3]  ;;  %s451_s4 = sshll.u32 %s592_s12, 3 }
  0x12   : > { %v251_v4 = vld [vmem:[%s236_s25] sm:$0x3]  ;;  %s249_s7 = scalar_lea.vmem %s586_s3, %s451_s4 }
  0x13   : > { %v254_v2 = vand.u32 255, %v253_v1 }
  0x15   : > { %v255_v5 = vcvt.s32.f32 %v254_v2 }
  0x17   : > { %v257_v6 = vsel %vm256_vm0, %v255_v5, 0.0  ;;  %v271_v7 = vmul.f32 %v255_v5, %v250_v3  ;;  %v284_v8 = vmul.f32 %v255_v5, %v251_v4 }
  0x18   : > { %258 = vadd.xlane.f32.xlu0 %v257_v6 }
  0x19   : > { %v272_v9 = vsel %vm256_vm0, %v271_v7, 0.0  ;;  %v285_v10 = vsel %vm256_vm0, %v284_v8, 0.0 }
  0x1a   : > { %286 = vadd.xlane.f32.xlu1 %v285_v10 }
  0x1c   : > { %273 = vadd.xlane.f32.xlu0 %v272_v9 }
  0xa5   : > { %v259_v11 = vpop.xlane.xlu0 %258 }
  0xa6   : > { %v260_v12 = vrot.slane %v259_v11, 4 }
  0xa7   : > { %v287_v13 = vpop.xlane.xlu1 %286 }
  0xa8   : > { %v261_v14 = vadd.f32 %v260_v12, %v259_v11  ;;  %v288_v15 = vrot.slane %v287_v13, 4 }
  0xa9   : > { %v274_v16 = vpop.xlane.xlu0 %273 }
  0xaa   : > { %v262_v17 = vrot.slane %v261_v14, 2  ;;  %v275_v18 = vrot.slane %v274_v16, 4  ;;  %v289_v19 = vadd.f32 %v288_v15, %v287_v13 }
  0xac   : > { %v276_v20 = vadd.f32 %v275_v18, %v274_v16  ;;  %v290_v21 = vrot.slane %v289_v19, 2  ;;  %v263_v22 = vadd.f32 %v262_v17, %v261_v14 }
  0xae   : > { %v277_v23 = vrot.slane %v276_v20, 2  ;;  %v264_v24 = vrot.slane %v263_v22, 1  ;;  %v291_v25 = vadd.f32 %v290_v21, %v289_v19 }
  0xb0   : > { %v265_v26 = vadd.f32 %v264_v24, %v263_v22  ;;  %v278_v27 = vadd.f32 %v277_v23, %v276_v20  ;;  %v292_v28 = vrot.slane %v291_v25, 1 }
  0xb2   : > { %454 = vpush %v265_v26  ;;  %v279_v29 = vrot.slane %v278_v27, 1  ;;  %v293_v30 = vadd.f32 %v292_v28, %v291_v25 }
  0xb4   : > { %v280_v31 = vadd.f32 %v279_v29, %v278_v27 }
  0xb6   : > { %456 = vpush %v280_v31 }
  0xb7   : > { %458 = vpush %v293_v30 }
  0xe3   : > { %s455_s26 = spop %454 }
  0xe4   : > { %v267_v32 = vstv %s455_s26 }
  0xe5   : > { %v268_v33 = vmax.f32 %v267_v32, 1.0  ;;  %v326_v41 = vsel %vm325_vm1, %v267_v32, 0.0 }
  0xe7   : > { %488 = vrcp.f32 %v268_v33  ;;  %s457_s27 = spop %456 }
  0xe8   : > { %s459_s28 = spop %458  ;;  %v282_v37 = vstv %s457_s27 }
  0xe9   : > { %v295_v38 = vstv %s459_s28 }
  0xf1   : > { %v489_v36 = vpop.eup %488 }
  0xf2   : > { %v283_v39 = vmul.f32 %v489_v36, %v282_v37  ;;  %v296_v40 = vmul.f32 %v489_v36, %v295_v38 }
  0xf4   : > { %v297_v42 = vsub.f32 %v250_v3, %v283_v39  ;;  %v328_v43 = vsel %vm327_vm2, %v283_v39, 0.0  ;;  %v299_v44 = vsub.f32 %v251_v4, %v296_v40  ;;  %v335_v6 = vsel %vm334_vm4, %v296_v40, 0.0 }
  0xf5   : > { %v329_v45 = vadd.f32 %v328_v43, %v326_v41 }
  0xf6   : > { %v300_v46 = vmul.f32 %v299_v44, %v255_v5  ;;  %v298_v47 = vmul.f32 %v297_v42, %v255_v5 }
  0xf8   : > { %v312_v48 = vmul.f32 %v300_v46, %v300_v46  ;;  %v301_v49 = vmul.f32 %v298_v47, %v298_v47 }
  0xfa   : > { %v313_v50 = vsel %vm256_vm0, %v312_v48, 0.0  ;;  %v302_v51 = vsel %vm256_vm0, %v301_v49, 0.0 }
  0xfb   : > { %314 = vadd.xlane.f32.xlu0 %v313_v50  ;;  %303 = vadd.xlane.f32.xlu1 %v302_v51 }
 0x188   : > { %v315_v52 = vpop.xlane.xlu0 %314  ;;  %v304_v53 = vpop.xlane.xlu1 %303 }
 0x189   : > { %v316_v54 = vrot.slane %v315_v52, 4  ;;  %v305_v55 = vrot.slane %v304_v53, 4 }
 0x18b   : > { %v317_v56 = vadd.f32 %v316_v54, %v315_v52  ;;  %v306_v57 = vadd.f32 %v305_v55, %v304_v53 }
 0x18d   : > { %v318_v58 = vrot.slane %v317_v56, 2  ;;  %v307_v59 = vrot.slane %v306_v57, 2 }
 0x18f   : > { %v319_v60 = vadd.f32 %v318_v58, %v317_v56  ;;  %v308_v61 = vadd.f32 %v307_v59, %v306_v57 }
 0x191   : > { %v309_v62 = vrot.slane %v308_v61, 1  ;;  %v320_v63 = vrot.slane %v319_v60, 1 }
 0x193   : > { %v310_v0 = vadd.f32 %v309_v62, %v308_v61  ;;  %v321_v1 = vadd.f32 %v320_v63, %v319_v60 }
 0x195   : > { %460 = vpush %v310_v0 }
 0x196   : > { %462 = vpush %v321_v1 }
 0x1c6   : > { %s461_s29 = spop %460 }
 0x1c7   : > { %v331_v2 = vstv %s461_s29  ;;  %s463_s30 = spop %462 }
 0x1c8   : > { %v332_v3 = vsel %vm330_vm3, %v331_v2, 0.0  ;;  %v338_v5 = vstv %s463_s30 }
 0x1c9   : > { %v333_v4 = vadd.f32 %v332_v3, %v329_v45  ;;  %v339_v8 = vsel %vm337_vm5, %v338_v5, 0.0 }
 0x1cb   : > { %v336_v7 = vadd.f32 %v335_v6, %v333_v4 }
 0x1cd   : > { %v340_v9 = vadd.f32 %v339_v8, %v336_v7 }
 0x1cf   : > { %342 = vst.msk [vmem:[%s249_s7] sm:$0xff] %vm341_vm6, %v340_v9 }
 0x1d0 PF: > { %s13_s14 = sadd.s32 1, %s512_s14   ;;  %s587_s12 = smov %s508_s13 }
 0x1d1   : > { %p10_p5 = scmp.ge.s32.totalorder %s13_s14, 4   ;;  %s588_s13 = smov %s590_s15 }
 0x1d3   :  { %12 = sbr.rel (!%p10_p5) target bundleno = 2 (0x2), region = 68 }

</bundles_post_ra>
